<compile_context>
chip_gen: v5e
topology: v5e:2x2
jax: 0.10.0
libtpu: 0.0.40
codegen_flags: <defaults>
</compile_context>

<pallas_src>
import jax
import jax.numpy as jnp
from jax.experimental import pallas as pl
from jax.experimental.pallas import tpu as pltpu


def _round_up(x: int, m: int) -> int:
    return ((x + m - 1) // m) * m


def _cdiv(a: int, b: int) -> int:
    return (a + b - 1) // b


def _sublane_multiple(itemsize: int) -> int:
    # Second-to-last block dim must be a multiple of the dtype's sublane tile.
    return {4: 8, 2: 16, 1: 32}.get(itemsize, 8)


def _tile_rows(n_rows: int, row_bytes_vmem: int, sub: int,
               block_budget_bytes: int) -> int:
    """Rows per block: sublane-aligned, within the VMEM byte budget, and small
    enough that the grid has >= 2 steps (so megacore can split it)."""
    if n_rows <= sub:
        return n_rows                       # full dim -> always a legal block
    budget_rows = max(sub, (block_budget_bytes // row_bytes_vmem) // sub * sub)
    half_rows = _round_up(_cdiv(n_rows, 2), sub)   # aim for >= 2 grid steps
    return max(sub, min(budget_rows, half_rows))


# ---------------------------------------------------------------------------
# Kernels
# ---------------------------------------------------------------------------

def _packed_kernel(x1_ref, x2_ref, w1_ref, w2_ref, sel_ref, b_ref, o_ref):
    # x1/x2: (rb, 128) native dtype   w1/w2: (1, 128) f32 (weight tiled to lanes)
    # sel:   (128, rpv) f32 block-diagonal segment-sum matrix
    # b:     (1,) f32 in SMEM          o: (rb, rpv) f32
    prod = (x1_ref[...].astype(jnp.float32) * w1_ref[...]
            + x2_ref[...].astype(jnp.float32) * w2_ref[...])
    # Segmented lane reduction (each group of E lanes -> one batch row) done as
    # a tiny matmul: the MXU is completely idle in this kernel.
    z = jnp.dot(prod, sel_ref[...], preferred_element_type=jnp.float32)
    o_ref[...] = jax.nn.sigmoid(z + b_ref[0]).astype(o_ref.dtype)


def _rowwise_kernel(x1_ref, x2_ref, w1_ref, w2_ref, b_ref, o_ref):
    # x1/x2: (tb, E) native dtype   w1/w2: (1, E) f32   b: (1,) SMEM   o: (tb, 1)
    prod = (x1_ref[...].astype(jnp.float32) * w1_ref[...]
            + x2_ref[...].astype(jnp.float32) * w2_ref[...])
    z = jnp.sum(prod, axis=-1, keepdims=True) + b_ref[0]   # single XLU reduce
    o_ref[...] = jax.nn.sigmoid(z).astype(o_ref.dtype)


# ---------------------------------------------------------------------------
# Wrapper
# ---------------------------------------------------------------------------

def mike_net_linear_forward(x1, x2, weight, bias, *,
                            block_budget_bytes: int = 4 << 20):
    """sigmoid(Linear_{2E->1}(concat([x1, x2], 1))) without materializing the
    concat.  x1, x2: (B, E); weight: (1, 2E) PyTorch layout; bias: (1,).
    Returns (B, 1) float32."""
    B, E = x1.shape
    assert x2.shape == (B, E)
    assert weight.shape == (1, 2 * E)
    assert x1.dtype == x2.dtype

    itemsize = x1.dtype.itemsize
    sub = _sublane_multiple(itemsize)

    w1 = weight[:, :E].astype(jnp.float32)     # (1, E)
    w2 = weight[:, E:].astype(jnp.float32)     # (1, E)
    b = bias.reshape(1).astype(jnp.float32)    # (1,)  -> SMEM scalar

    compiler_params = pltpu.CompilerParams(
        dimension_semantics=("parallel",),        # shard batch tiles across TCs
        # 2 inputs x 2 pipeline buffers x <=4 MiB + weights/out << 32 MiB, which
        # is <= the scoped default on v6e/v7x and <= physical VMEM on v5e.
        vmem_limit_bytes=32 * 1024 * 1024,
    )

    # ---- Lane-packed fast path for small E -------------------------------
    packed_ok = (E <= 128) and (128 % E == 0) and ((B * E) % 128 == 0)
    if packed_ok:
        rpv = 128 // E                 # batch rows per 128-lane VMEM row
        R = (B * E) // 128             # packed rows
        x1p = x1.reshape(R, 128)       # free row-major metadata reshape
        x2p = x2.reshape(R, 128)
        w1p = jnp.tile(w1, (1, rpv))   # (1, 128)
        w2p = jnp.tile(w2, (1, rpv))
        sel = (jnp.arange(128, dtype=jnp.int32)[:, None] // E ==
               jnp.arange(rpv, dtype=jnp.int32)[None, :]).astype(jnp.float32)

        rb = _tile_rows(R, 128 * itemsize, sub, block_budget_bytes)
        grid = (_cdiv(R, rb),)
        rows = grid[0] * rb
        cost = pl.CostEstimate(
            flops=rows * (3 * 128 + 2 * 128 * rpv) + rows * rpv,
            transcendentals=rows * rpv,
            bytes_accessed=(2 * rows * 128 * itemsize + 2 * 128 * 4
                            + 128 * rpv * 4 + 4 + rows * rpv * 4),
        )

        out = pl.pallas_call(
            _packed_kernel,
            out_shape=jax.ShapeDtypeStruct((R, rpv), jnp.float32),
            grid_spec=pltpu.PrefetchScalarGridSpec(
                num_scalar_prefetch=0,
                grid=grid,
                in_specs=[
                    pl.BlockSpec((rb, 128), lambda i: (i, 0)),   # x1 packed tile
                    pl.BlockSpec((rb, 128), lambda i: (i, 0)),   # x2 packed tile
                    pl.BlockSpec((1, 128), lambda i: (0, 0)),    # w1 (resident)
                    pl.BlockSpec((1, 128), lambda i: (0, 0)),    # w2 (resident)
                    pl.BlockSpec((128, rpv), lambda i: (0, 0)),  # segment matrix
                    pl.BlockSpec(memory_space=pltpu.MemorySpace.SMEM),  # bias
                ],
                out_specs=pl.BlockSpec((rb, rpv), lambda i: (i, 0)),
            ),
            compiler_params=compiler_params,
            cost_estimate=cost,
        )(x1p, x2p, w1p, w2p, sel, b)

        # out[r, j] is the result for batch row r*rpv + j -> row-major reshape.
        return out.reshape(B, 1)

    # ---- General row-wise path (any E, any B; ragged last tile) ----------
    tb = _tile_rows(B, _round_up(E, 128) * itemsize, sub, block_budget_bytes)
    grid = (_cdiv(B, tb),)
    rows = grid[0] * tb
    cost = pl.CostEstimate(
        flops=rows * (4 * E + 2),
        transcendentals=rows,
        bytes_accessed=2 * rows * E * itemsize + 2 * E * 4 + 4 + rows * 4,
    )

    out = pl.pallas_call(
        _rowwise_kernel,
        out_shape=jax.ShapeDtypeStruct((B, 1), jnp.float32),
        grid_spec=pltpu.PrefetchScalarGridSpec(
            num_scalar_prefetch=0,
            grid=grid,
            in_specs=[
                pl.BlockSpec((tb, E), lambda i: (i, 0)),   # x1 tile
                pl.BlockSpec((tb, E), lambda i: (i, 0)),   # x2 tile
                pl.BlockSpec((1, E), lambda i: (0, 0)),    # w1 (resident)
                pl.BlockSpec((1, E), lambda i: (0, 0)),    # w2 (resident)
                pl.BlockSpec(memory_space=pltpu.MemorySpace.SMEM),  # bias
            ],
            out_specs=pl.BlockSpec((tb, 1), lambda i: (i, 0)),
        ),
        compiler_params=compiler_params,
        cost_estimate=cost,
    )(x1, x2, w1, w2, b)
    return out


if __name__ == "__main__":
    def ref_forward(x1, x2, weight, bias):
        xcat = jnp.concatenate([x1, x2], axis=1).astype(jnp.float32)
        return jax.nn.sigmoid(xcat @ weight.astype(jnp.float32).T
                              + bias.astype(jnp.float32))

    key = jax.random.PRNGKey(0)
    k_x1, k_x2, k_w, k_b = jax.random.split(key, 4)

    embedding_dim = 16
    fan_in = 2 * embedding_dim
    bound = 1.0 / (fan_in ** 0.5)
    weight = jax.random.uniform(k_w, (1, fan_in), minval=-bound, maxval=bound,
                                dtype=jnp.float32)
    bias = jax.random.uniform(k_b, (1,), minval=-bound, maxval=bound,
                              dtype=jnp.float32)

    # Case 1: lane-packed fast path (B*E % 128 == 0) with a 2-step grid.
    batch = 128
    x1 = jax.random.normal(k_x1, (batch, embedding_dim), dtype=jnp.float32)
    x2 = jax.random.normal(k_x2, (batch, embedding_dim), dtype=jnp.float32)
    out = jax.block_until_ready(mike_net_linear_forward(x1, x2, weight, bias))
    ref = ref_forward(x1, x2, weight, bias)
    assert out.shape == (batch, 1)
    assert jnp.allclose(out, ref, atol=1e-5, rtol=1e-5)

    # Case 2: row-wise fallback with a ragged last batch tile (no padding copy).
    batch = 10
    x1 = jax.random.normal(k_x1, (batch, embedding_dim), dtype=jnp.float32)
    x2 = jax.random.normal(k_x2, (batch, embedding_dim), dtype=jnp.float32)
    out = jax.block_until_ready(mike_net_linear_forward(x1, x2, weight, bias))
    ref = ref_forward(x1, x2, weight, bias)
    assert out.shape == (batch, 1)
    assert jnp.allclose(out, ref, atol=1e-5, rtol=1e-5)

    print("KERNEL_OK")
</pallas_src>

<mosaic_0001>
module attributes {stable_mosaic.version = 11 : i64} {
  func.func @_packed_kernel(%arg0: i32, %arg1: memref<8x128xf32, #tpu.memory_space<vmem>>, %arg2: memref<8x128xf32, #tpu.memory_space<vmem>>, %arg3: memref<1x128xf32, #tpu.memory_space<vmem>>, %arg4: memref<1x128xf32, #tpu.memory_space<vmem>>, %arg5: memref<128x8xf32, #tpu.memory_space<vmem>>, %arg6: memref<1xf32, #tpu.memory_space<smem>>, %arg7: memref<8x8xf32, #tpu.memory_space<vmem>>) attributes {dimension_semantics = [#tpu.dimension_semantics<parallel>], iteration_bounds = array<i64: 2>, scalar_prefetch = 0 : i64, scratch_operands = 0 : i64, tpu.core_type = #tpu.core_type<tc>, window_params = [{transform_indices = @transform_0, window_bounds = array<i64: 8, 128>}, {transform_indices = @transform_1, window_bounds = array<i64: 8, 128>}, {pipeline_mode = #tpu.pipeline_mode<synchronous>, transform_indices = @transform_2, window_bounds = array<i64: 1, 128>}, {pipeline_mode = #tpu.pipeline_mode<synchronous>, transform_indices = @transform_3, window_bounds = array<i64: 1, 128>}, {pipeline_mode = #tpu.pipeline_mode<synchronous>, transform_indices = @transform_4, window_bounds = array<i64: 128, 8>}, {transform_indices = @transform_5, window_bounds = array<i64: 1>}, {transform_indices = @transform_6, window_bounds = array<i64: 8, 8>}]} {
    %c0 = arith.constant 0 : index
    %c0_0 = arith.constant 0 : index
    %0 = vector.load %arg1[%c0, %c0_0] : memref<8x128xf32, #tpu.memory_space<vmem>>, vector<8x128xf32>
    %c0_1 = arith.constant 0 : index
    %c0_2 = arith.constant 0 : index
    %1 = vector.load %arg3[%c0_1, %c0_2] : memref<1x128xf32, #tpu.memory_space<vmem>>, vector<1x128xf32>
    %2 = vector.broadcast %1 : vector<1x128xf32> to vector<8x128xf32>
    %3 = arith.mulf %0, %2 : vector<8x128xf32>
    %c0_3 = arith.constant 0 : index
    %c0_4 = arith.constant 0 : index
    %4 = vector.load %arg2[%c0_3, %c0_4] : memref<8x128xf32, #tpu.memory_space<vmem>>, vector<8x128xf32>
    %c0_5 = arith.constant 0 : index
    %c0_6 = arith.constant 0 : index
    %5 = vector.load %arg4[%c0_5, %c0_6] : memref<1x128xf32, #tpu.memory_space<vmem>>, vector<1x128xf32>
    %6 = vector.broadcast %5 : vector<1x128xf32> to vector<8x128xf32>
    %7 = arith.mulf %4, %6 : vector<8x128xf32>
    %8 = arith.addf %3, %7 : vector<8x128xf32>
    %c0_7 = arith.constant 0 : index
    %c0_8 = arith.constant 0 : index
    %9 = vector.load %arg5[%c0_7, %c0_8] : memref<128x8xf32, #tpu.memory_space<vmem>>, vector<128x8xf32>
    %cst = arith.constant dense<0.000000e+00> : vector<8x8xf32>
    %10 = tpu.matmul %8, %9, %cst {dimension_numbers = #tpu.dot_dimension_numbers<[1], [0], [0], [1], [0, 0, 1, 1], [], []>} : vector<8x128xf32>, vector<128x8xf32>, vector<8x8xf32> -> vector<8x8xf32>
    %c0_9 = arith.constant 0 : index
    %11 = memref.load %arg6[%c0_9] : memref<1xf32, #tpu.memory_space<smem>>
    %12 = vector.broadcast %11 : f32 to vector<8x8xf32>
    %13 = arith.addf %10, %12 : vector<8x8xf32>
    %14 = arith.negf %13 : vector<8x8xf32>
    %15 = math.exp %14 : vector<8x8xf32>
    %cst_10 = arith.constant 1.000000e+00 : f32
    %16 = vector.broadcast %cst_10 : f32 to vector<8x8xf32>
    %17 = arith.addf %16, %15 : vector<8x8xf32>
    %18 = arith.divf %16, %17 : vector<8x8xf32>
    %c0_11 = arith.constant 0 : index
    %c0_12 = arith.constant 0 : index
    %19 = vector.load %arg7[%c0_11, %c0_12] : memref<8x8xf32, #tpu.memory_space<vmem>>, vector<8x8xf32>
    tpu.vector_store %arg7[%c0_11, %c0_12], %18 {strides = array<i32>} : memref<8x8xf32, #tpu.memory_space<vmem>>, vector<8x8xf32>,
    return
  }
  func.func @transform_0(%arg0: i32) -> (i32, i32) {
    %c0_i32 = arith.constant 0 : i32
    %c0_i32_0 = arith.constant 0 : i32
    return %arg0, %c0_i32 : i32, i32
  }
  func.func @transform_1(%arg0: i32) -> (i32, i32) {
    %c0_i32 = arith.constant 0 : i32
    %c0_i32_0 = arith.constant 0 : i32
    return %arg0, %c0_i32 : i32, i32
  }
  func.func @transform_2(%arg0: i32) -> (i32, i32) {
    %c0_i32 = arith.constant 0 : i32
    %c0_i32_0 = arith.constant 0 : i32
    %c0_i32_1 = arith.constant 0 : i32
    return %c0_i32, %c0_i32_0 : i32, i32
  }
  func.func @transform_3(%arg0: i32) -> (i32, i32) {
    %c0_i32 = arith.constant 0 : i32
    %c0_i32_0 = arith.constant 0 : i32
    %c0_i32_1 = arith.constant 0 : i32
    return %c0_i32, %c0_i32_0 : i32, i32
  }
  func.func @transform_4(%arg0: i32) -> (i32, i32) {
    %c0_i32 = arith.constant 0 : i32
    %c0_i32_0 = arith.constant 0 : i32
    %c0_i32_1 = arith.constant 0 : i32
    return %c0_i32, %c0_i32_0 : i32, i32
  }
  func.func @transform_5(%arg0: i32) -> i32 {
    %c0_i32 = arith.constant 0 : i32
    %c0_i32_0 = arith.constant 0 : i32
    return %c0_i32 : i32
  }
  func.func @transform_6(%arg0: i32) -> (i32, i32) {
    %c0_i32 = arith.constant 0 : i32
    %c0_i32_0 = arith.constant 0 : i32
    return %arg0, %c0_i32 : i32, i32
  }
}

</mosaic_0001>

<bundles_post_ra>
// kernel: tpu_custom_call.1
= control target key start
LH: loop header
LB: loop body
LE: loop exit
PB: predicated region body
PF: predicated region fallthrough
CT: control target
= control target key end

     0   :  { %s473_s23 = smov 0   ;;  %s552_s0 = inlined_call_operand.vmem [shape: f32[16,128], index: 0, kind: input, shape index: {}]   ;;  %s553_s1 = inlined_call_operand.vmem [shape: f32[16,128], index: 1, kind: input, shape index: {}]   ;;  %s554_s2 = inlined_call_operand.vmem [shape: f32[1,128], index: 2, kind: input, shape index: {}]   ;;  %s555_s3 = inlined_call_operand.vmem [shape: f32[1,128], index: 3, kind: input, shape index: {}]   ;;  %s556_s4 = inlined_call_operand.vmem [shape: f32[128,8], index: 4, kind: input, shape index: {}]   ;;  %s557_s5 = inlined_call_operand.<no memory space> [shape: f32[1], index: 5, kind: input, shape index: {}]   ;;  %s558_s6 = inlined_call_operand.vmem [shape: f32[16,8], index: 6, kind: output, shape index: {}]  }
   0x1   :  { %11 = sst [smem:[#allocation2]] %s557_s5 }
   0x2 LB: > { %s402_s24 = sadd.s32 4294967295, %s433_s23   ;;  %p406_p0 = scmp.ge.s32.totalorder %s433_s23, 1  ;;  %s433_s23 = sphi %s473_s23, %s17_s23  }
   0x3   : > { %p221_p1 = scmp.lt.s32.totalorder %s433_s23, 3 }
   0x5   : > { %p222_p2 = pnand %p406_p0, %p221_p1 }
   0x6   : > { %p253_p3 = scmp.lt.s32.totalorder (!%p222_p2), %s402_s24, 1  ;;  %s294_s20 = sld [smem:[#allocation2]] (!%p222_p2) }
   0x7   : > { %225 = sbr.rel (%p222_p2) target bundleno = 201 (0xc9), region = 44 }
   0xc   : > { %v293_v0 = vld [vmem:[%s556_s4 + $0x78] sm:$0xff]  ;;  %v292_v1 = vld [vmem:[%s556_s4 + $0x70] sm:$0xff]  ;;  %v291_v2 = vld [vmem:[%s556_s4 + $0x68] sm:$0xff]  ;;  %s560_s24 = smov (!%p253_p3, %s402_s24), 1  ;;  %v295_v23 = vstv %s294_s20  ;;  %vm335_vm3 = vcmask 64512  }
   0xd   : > { %296 = vmatpush.msra.mxu0 %v293_v0  ;;  %v290_v3 = vld [vmem:[%s556_s4 + $0x60] sm:$0xff]  ;;  %v289_v4 = vld [vmem:[%s556_s4 + $0x58] sm:$0xff]  ;;  %v288_v5 = vld [vmem:[%s556_s4 + $0x50] sm:$0xff]  ;;  %s508_s18 = sshll.u32 %s560_s24, 3 }
   0xe   : > { %v287_v6 = vld [vmem:[%s556_s4 + $0x48] sm:$0xff]  ;;  %v286_v7 = vld [vmem:[%s556_s4 + $0x40] sm:$0xff]  ;;  %v285_v8 = vld [vmem:[%s556_s4 + $0x38] sm:$0xff]  ;;  %s256_s5 = scalar_lea.vmem %s552_s0, %s508_s18  ;;  %s260_s24 = scalar_lea.vmem %s553_s1, %s508_s18 }
   0xf   : > { %297 = vmatpush.msra.mxu0 %v292_v1  ;;  %v284_v9 = vld [vmem:[%s556_s4 + $0x30] sm:$0xff]  ;;  %v283_v10 = vld [vmem:[%s556_s4 + $0x28] sm:$0xff]  ;;  %v282_v11 = vld [vmem:[%s556_s4 + $0x20] sm:$0xff]  ;;  %s264_s25 = scalar_lea.vmem %s558_s6, %s508_s18 }
  0x10   : > { %v421_v12 = vld [vmem:[%s554_s2] ss:$0 sm:$0xff]  ;;  %v281_v16 = vld [vmem:[%s556_s4 + $0x18] sm:$0xff]  ;;  %v280_v17 = vld [vmem:[%s556_s4 + $0x10] sm:$0xff] }
  0x11   : > { %298 = vmatpush.msra.mxu0 %v291_v2  ;;  %v422_v13 = vld [vmem:[%s555_s3] ss:$0 sm:$0xff]  ;;  %v279_v20 = vld [vmem:[%s556_s4 + $0x8] sm:$0xff] }
  0x12   : > { %v265_v14 = vld [vmem:[%s256_s5] sm:$0xff] }
  0x13   : > { %299 = vmatpush.msra.mxu0 %v290_v3  ;;  %v271_v15 = vld [vmem:[%s260_s24] sm:$0xff]  ;;  %v270_v18 = vmul.f32 %v421_v12, %v265_v14 }
  0x14   : > { %v276_v19 = vmul.f32 %v422_v13, %v271_v15  ;;  %v278_v21 = vld [vmem:[%s556_s4] sm:$0xff] }
  0x15   : > { %300 = vmatpush.msra.mxu0 %v289_v4 }
  0x16   : > { %v277_v22 = vadd.f32 %v276_v19, %v270_v18 }
  0x17   : > { %301 = vmatpush.msra.mxu0 %v288_v5 }
  0x19   : > { %302 = vmatpush.msra.mxu0 %v287_v6 }
  0x1b   : > { %303 = vmatpush.msra.mxu0 %v286_v7 }
  0x1d   : > { %304 = vmatpush.msra.mxu0 %v285_v8 }
  0x1f   : > { %305 = vmatpush.msra.mxu0 %v284_v9 }
  0x21   : > { %306 = vmatpush.msra.mxu0 %v283_v10 }
  0x23   : > { %307 = vmatpush.msra.mxu0 %v282_v11 }
  0x25   : > { %308 = vmatpush.msra.mxu0 %v281_v16 }
  0x27   : > { %309 = vmatpush.msra.mxu0 %v280_v17 }
  0x29   : > { %310 = vmatpush.msra.mxu0 %v279_v20 }
  0x2b   : > { %311 = vmatpush.msra.mxu0 %v278_v21 }
  0x2c   : > { %312 = vmatmul.f32.vlgmr.msra.gmra.mxu0 %v277_v22 }
  0xa9   : > { %v313_v24 = vpop.f32.mrf.mxu0 }
  0xaa   : > { %v314_v25 = vadd.f32 %v313_v24, %v295_v23 }
  0xac   : > { %v410_v26 = vmul.f32 -1.442695, %v314_v25 }
  0xae   : > { %423 = vpow2.f32 %v410_v26 }
  0xb4   : > { %v424_v27 = vpop.eup %423 }
  0xb5   : > { %v319_v28 = vadd.f32 1.0, %v424_v27 }
  0xb7   : > { %425 = vrcp.f32 %v319_v28  ;;  %v331_v32 = vand.u32 2147483648, %v319_v28  ;;  %v329_v34 = vand.u32 2147483647, %v319_v28  ;;  %vm325_vm1 = vweird.f32 %v319_v28 }
  0xb9   : > { %v332_v36 = vor.u32 1.1754944e-38, %v331_v32  ;;  %vm330_vm4 = vcmp.eq.f32.partialorder %v329_v34, 8.507059e+37 }
  0xbd   : > { %v426_v29 = vpop.eup %425 }
  0xbe   : > { %v321_v30 = vmul.f32 %v426_v29, %v319_v28  ;;  %vm326_vm0 = vweird.f32 %v426_v29 }
  0xbf   : > { %vm327_vm2 = vmor %vm325_vm1, %vm326_vm0 }
  0xc0   : > { %v322_v31 = vsub.f32 1.0, %v321_v30 }
  0xc2   : > { %v323_v33 = vmul.f32 %v426_v29, %v322_v31 }
  0xc4   : > { %v324_v35 = vadd.f32 %v426_v29, %v323_v33 }
  0xc6   : > { %v328_v37 = vsel %vm327_vm2, %v426_v29, %v324_v35 }
  0xc7   : > { %v333_v38 = vsel %vm330_vm4, %v332_v36, %v328_v37 }
  0xc8   : > { %336 = vst.msk [vmem:[%s264_s25] sm:$0xff] %vm335_vm3, %v333_v38 }
  0xc9 PF: > { %s17_s23 = sadd.s32 1, %s433_s23  }
  0xca   : > { %p14_p4 = scmp.ge.s32.totalorder %s17_s23, 4  }
  0xcc   :  { %16 = sbr.rel (!%p14_p4) target bundleno = 2 (0x2), region = 77 }

</bundles_post_ra>
